<compile_context>
chip_gen: v7x
topology: tpu7x:2x2x1
jax: 0.10.0
libtpu: 0.0.40
codegen_flags: <defaults>
</compile_context>

<pallas_src>
import jax
import jax.numpy as jnp
from jax.experimental import pallas as pl
from jax.experimental.pallas import tpu as pltpu


_SQRT_2_OVER_PI = 0.7978845608028654


def _gelu_tanh(h):
    # TODO(synk): PyTorch nn.GELU() defaults to the exact erf formulation; the
    # tanh approximation is used here (tanh lowers to the EUP in Mosaic),
    # max abs deviation ~1e-3.  The pure-JAX reference uses the same formula.
    return 0.5 * h * (1.0 + jnp.tanh(_SQRT_2_OVER_PI * (h + 0.044715 * h * h * h)))


def _vmem_limit_bytes():
    """Chip-aware scoped-VMEM limit: ~3/4 of physical, capped at 96 MiB."""
    try:
        cap = pltpu.get_tpu_info().vmem_capacity_bytes
    except Exception:  # conservative fallback (covers v7x's 64 MiB physical)
        cap = 64 * 1024 * 1024
    return int(min(96 * 1024 * 1024, (cap * 3) // 4))


def _resmlp_fused_kernel(x_ref, wp_ref, bp_ref, v1_ref, w1_ref, fb1_ref,
                         w2_ref, v2_ref, o_ref):
    """One batch item: patch-mix residual then channel-MLP residual, fused.

      y   = x + ls1 * (Wp @ (a1*x + b1) + bp)
      out = y + ls2 * (GELU((a2*y + b2) @ W1^T + fb1) @ W2^T + fb2)
    """
    f32 = jnp.float32
    bf16 = jnp.bfloat16

    x = x_ref[0].astype(f32)                               # (N, D)

    v1 = v1_ref[...]                                       # (3, D): a1, b1, ls1
    a1, b1, g1 = v1[0:1], v1[1:2], v1[2:3]                 # (1, D) each
    v2 = v2_ref[...]                                       # (4, D): a2, b2, ls2, fc2-bias
    a2, b2, g2, c2 = v2[0:1], v2[1:2], v2[2:3], v2[3:4]

    # ---- cross-patch mixing (affine_1 -> Linear(N,N) -> layerscale residual) ----
    u = (a1 * x + b1).astype(bf16)                         # affine_1 in f32, bf16 for MXU
    r1 = jnp.dot(wp_ref[...], u, preferred_element_type=f32)   # (N, D), f32 acc
    r1 = r1 + bp_ref[...]                                  # (N, 1) bias, lane-broadcast
    y = x + g1 * r1                                        # (N, D) f32, stays in VMEM

    # ---- channel MLP (affine_2 -> Linear(D,4D) -> GELU -> Linear(4D,D) -> residual) ----
    u2 = (a2 * y + b2).astype(bf16)
    h = jnp.dot(u2, w1_ref[...], preferred_element_type=f32) + fb1_ref[...]   # (N, H)
    h = _gelu_tanh(h).astype(bf16)                         # GELU in f32 (v5e-safe), bf16 to MXU
    r2 = jnp.dot(h, w2_ref[...], preferred_element_type=f32) + c2             # (N, D)

    o_ref[0] = (y + g2 * r2).astype(o_ref.dtype)


def pack_resmlp_params(p):
    """One-time packing: transpose + bf16 weights, stacked per-channel vectors."""
    f32, bf16 = jnp.float32, jnp.bfloat16
    N = p["wp"].shape[0]
    H = p["w1"].shape[0]
    return {
        "wp": p["wp"].astype(bf16),                                   # (N, N)
        "bp": p["bp"].reshape(N, 1).astype(f32),                      # (N, 1)
        "v1": jnp.stack([p["alpha1"], p["beta1"], p["ls1"]]).astype(f32),          # (3, D)
        "w1t": p["w1"].T.astype(bf16),                                # (D, H)
        "fb1": p["b1"].reshape(1, H).astype(f32),                     # (1, H)
        "w2t": p["w2"].T.astype(bf16),                                # (H, D)
        "v2": jnp.stack([p["alpha2"], p["beta2"], p["ls2"], p["b2"]]).astype(f32),  # (4, D)
    }


def resmlp_block(x, packed):
    """Fused Pallas forward of ResMLP_BLocks. x: (B, N, D); packed = pack_resmlp_params(...)."""
    B, N, D = x.shape
    H = packed["w1t"].shape[1]

    grid_spec = pltpu.PrefetchScalarGridSpec(
        num_scalar_prefetch=0,
        grid=(B,),
        in_specs=[
            pl.BlockSpec((1, N, D), lambda b: (b, 0, 0)),   # x
            pl.BlockSpec((N, N), lambda b: (0, 0)),         # wp (bf16)
            pl.BlockSpec((N, 1), lambda b: (0, 0)),         # bp
            pl.BlockSpec((3, D), lambda b: (0, 0)),          # [alpha1, beta1, ls1]
            pl.BlockSpec((D, H), lambda b: (0, 0)),         # W1^T (bf16)
            pl.BlockSpec((1, H), lambda b: (0, 0)),         # fc1 bias
            pl.BlockSpec((H, D), lambda b: (0, 0)),         # W2^T (bf16)
            pl.BlockSpec((4, D), lambda b: (0, 0)),          # [alpha2, beta2, ls2, fc2 bias]
        ],
        out_specs=pl.BlockSpec((1, N, D), lambda b: (b, 0, 0)),
    )

    return pl.pallas_call(
        _resmlp_fused_kernel,
        out_shape=jax.ShapeDtypeStruct((B, N, D), x.dtype),
        grid_spec=grid_spec,
        compiler_params=pltpu.CompilerParams(
            dimension_semantics=("parallel",),
            vmem_limit_bytes=_vmem_limit_bytes(),
        ),
    )(x, packed["wp"], packed["bp"], packed["v1"], packed["w1t"],
      packed["fb1"], packed["w2t"], packed["v2"])


def resmlp_block_ref(x, p):
    """Pure-JAX f32 reference mirroring the PyTorch forward."""
    a1 = p["alpha1"] * x + p["beta1"]
    r1 = jnp.einsum("bmd,nm->bnd", a1, p["wp"]) + p["bp"][None, :, None]
    x = x + p["ls1"] * r1
    a2 = p["alpha2"] * x + p["beta2"]
    h = _gelu_tanh(a2 @ p["w1"].T + p["b1"])
    r2 = h @ p["w2"].T + p["b2"]
    return x + p["ls2"] * r2


if __name__ == "__main__":
    # (batch, nb_patches, dim); dim=128 keeps the lane axis dense (unmasked stores),
    # B=2 gives a >=2-step parallel grid (both v7x TensorCores busy).
    B, N, D = 2, 8, 128
    H = 4 * D
    layerscale_init = 0.1

    keys = jax.random.split(jax.random.PRNGKey(0), 11)
    x = jax.random.normal(keys[0], (B, N, D), jnp.float32)

    params = {
        "alpha1": 1.0 + 0.1 * jax.random.normal(keys[1], (D,), jnp.float32),
        "beta1": 0.1 * jax.random.normal(keys[2], (D,), jnp.float32),
        "alpha2": 1.0 + 0.1 * jax.random.normal(keys[3], (D,), jnp.float32),
        "beta2": 0.1 * jax.random.normal(keys[4], (D,), jnp.float32),
        "wp": jax.random.normal(keys[5], (N, N), jnp.float32) / float(N) ** 0.5,
        "bp": 0.1 * jax.random.normal(keys[6], (N,), jnp.float32),
        "w1": jax.random.normal(keys[7], (H, D), jnp.float32) / float(D) ** 0.5,
        "b1": 0.1 * jax.random.normal(keys[8], (H,), jnp.float32),
        "w2": jax.random.normal(keys[9], (D, H), jnp.float32) / float(H) ** 0.5,
        "b2": 0.1 * jax.random.normal(keys[10], (D,), jnp.float32),
        "ls1": layerscale_init * jnp.ones((D,), jnp.float32),
        "ls2": layerscale_init * jnp.ones((D,), jnp.float32),
    }

    packed = jax.tree_util.tree_map(jax.block_until_ready, pack_resmlp_params(params))

    y = jax.block_until_ready(jax.jit(resmlp_block)(x, packed))
    y_ref = resmlp_block_ref(x, params)

    assert y.shape == x.shape
    max_err = float(jnp.max(jnp.abs(y - y_ref)))
    # bf16 MXU operands add ~1e-3-level absolute error vs. the f32 reference.
    assert jnp.allclose(y, y_ref, atol=1e-2, rtol=1e-2), max_err

    print("KERNEL_OK")
</pallas_src>

<mosaic_0001>
module attributes {stable_mosaic.version = 11 : i64} {
  func.func @_resmlp_fused_kernel(%arg0: i32, %arg1: memref<1x8x128xf32, #tpu.memory_space<vmem>>, %arg2: memref<8x8xbf16, #tpu.memory_space<vmem>>, %arg3: memref<8x1xf32, #tpu.memory_space<vmem>>, %arg4: memref<3x128xf32, #tpu.memory_space<vmem>>, %arg5: memref<128x512xbf16, #tpu.memory_space<vmem>>, %arg6: memref<1x512xf32, #tpu.memory_space<vmem>>, %arg7: memref<512x128xbf16, #tpu.memory_space<vmem>>, %arg8: memref<4x128xf32, #tpu.memory_space<vmem>>, %arg9: memref<1x8x128xf32, #tpu.memory_space<vmem>>) attributes {dimension_semantics = [#tpu.dimension_semantics<parallel>], iteration_bounds = array<i64: 2>, scalar_prefetch = 0 : i64, scratch_operands = 0 : i64, tpu.core_type = #tpu.core_type<tc>, window_params = [{transform_indices = @transform_0, window_bounds = array<i64: 1, 8, 128>}, {pipeline_mode = #tpu.pipeline_mode<synchronous>, transform_indices = @transform_1, window_bounds = array<i64: 8, 8>}, {pipeline_mode = #tpu.pipeline_mode<synchronous>, transform_indices = @transform_2, window_bounds = array<i64: 8, 1>}, {pipeline_mode = #tpu.pipeline_mode<synchronous>, transform_indices = @transform_3, window_bounds = array<i64: 3, 128>}, {pipeline_mode = #tpu.pipeline_mode<synchronous>, transform_indices = @transform_4, window_bounds = array<i64: 128, 512>}, {pipeline_mode = #tpu.pipeline_mode<synchronous>, transform_indices = @transform_5, window_bounds = array<i64: 1, 512>}, {pipeline_mode = #tpu.pipeline_mode<synchronous>, transform_indices = @transform_6, window_bounds = array<i64: 512, 128>}, {pipeline_mode = #tpu.pipeline_mode<synchronous>, transform_indices = @transform_7, window_bounds = array<i64: 4, 128>}, {transform_indices = @transform_8, window_bounds = array<i64: 1, 8, 128>}]} {
    %c0 = arith.constant 0 : index
    %c0_0 = arith.constant 0 : index
    %c0_1 = arith.constant 0 : index
    %0 = vector.load %arg1[%c0, %c0_0, %c0_1] : memref<1x8x128xf32, #tpu.memory_space<vmem>>, vector<1x8x128xf32>
    %1 = vector.shape_cast %0 : vector<1x8x128xf32> to vector<8x128xf32>
    %c0_2 = arith.constant 0 : index
    %c0_3 = arith.constant 0 : index
    %2 = vector.load %arg4[%c0_2, %c0_3] : memref<3x128xf32, #tpu.memory_space<vmem>>, vector<3x128xf32>
    %3 = vector.extract_strided_slice %2 {offsets = [0, 0], sizes = [1, 128], strides = [1, 1]} : vector<3x128xf32> to vector<1x128xf32>
    %4 = vector.extract_strided_slice %2 {offsets = [1, 0], sizes = [1, 128], strides = [1, 1]} : vector<3x128xf32> to vector<1x128xf32>
    %5 = vector.extract_strided_slice %2 {offsets = [2, 0], sizes = [1, 128], strides = [1, 1]} : vector<3x128xf32> to vector<1x128xf32>
    %c0_4 = arith.constant 0 : index
    %c0_5 = arith.constant 0 : index
    %6 = vector.load %arg8[%c0_4, %c0_5] : memref<4x128xf32, #tpu.memory_space<vmem>>, vector<4x128xf32>
    %7 = vector.extract_strided_slice %6 {offsets = [0, 0], sizes = [1, 128], strides = [1, 1]} : vector<4x128xf32> to vector<1x128xf32>
    %8 = vector.extract_strided_slice %6 {offsets = [1, 0], sizes = [1, 128], strides = [1, 1]} : vector<4x128xf32> to vector<1x128xf32>
    %9 = vector.extract_strided_slice %6 {offsets = [2, 0], sizes = [1, 128], strides = [1, 1]} : vector<4x128xf32> to vector<1x128xf32>
    %10 = vector.extract_strided_slice %6 {offsets = [3, 0], sizes = [1, 128], strides = [1, 1]} : vector<4x128xf32> to vector<1x128xf32>
    %11 = vector.broadcast %3 : vector<1x128xf32> to vector<8x128xf32>
    %12 = arith.mulf %11, %1 : vector<8x128xf32>
    %13 = vector.broadcast %4 : vector<1x128xf32> to vector<8x128xf32>
    %14 = arith.addf %12, %13 : vector<8x128xf32>
    %15 = arith.truncf %14 : vector<8x128xf32> to vector<8x128xbf16>
    %c0_6 = arith.constant 0 : index
    %c0_7 = arith.constant 0 : index
    %16 = vector.load %arg2[%c0_6, %c0_7] : memref<8x8xbf16, #tpu.memory_space<vmem>>, vector<8x8xbf16>
    %cst = arith.constant dense<0.000000e+00> : vector<8x128xf32>
    %17 = tpu.matmul %16, %15, %cst {dimension_numbers = #tpu.dot_dimension_numbers<[1], [0], [0], [1], [0, 0, 1, 1], [], []>} : vector<8x8xbf16>, vector<8x128xbf16>, vector<8x128xf32> -> vector<8x128xf32>
    %c0_8 = arith.constant 0 : index
    %c0_9 = arith.constant 0 : index
    %18 = vector.load %arg3[%c0_8, %c0_9] : memref<8x1xf32, #tpu.memory_space<vmem>>, vector<8x1xf32>
    %19 = vector.broadcast %18 : vector<8x1xf32> to vector<8x128xf32>
    %20 = arith.addf %17, %19 : vector<8x128xf32>
    %21 = vector.broadcast %5 : vector<1x128xf32> to vector<8x128xf32>
    %22 = arith.mulf %21, %20 : vector<8x128xf32>
    %23 = arith.addf %1, %22 : vector<8x128xf32>
    %24 = vector.broadcast %7 : vector<1x128xf32> to vector<8x128xf32>
    %25 = arith.mulf %24, %23 : vector<8x128xf32>
    %26 = vector.broadcast %8 : vector<1x128xf32> to vector<8x128xf32>
    %27 = arith.addf %25, %26 : vector<8x128xf32>
    %28 = arith.truncf %27 : vector<8x128xf32> to vector<8x128xbf16>
    %c0_10 = arith.constant 0 : index
    %c0_11 = arith.constant 0 : index
    %29 = vector.load %arg5[%c0_10, %c0_11] : memref<128x512xbf16, #tpu.memory_space<vmem>>, vector<128x512xbf16>
    %cst_12 = arith.constant dense<0.000000e+00> : vector<8x512xf32>
    %30 = tpu.matmul %28, %29, %cst_12 {dimension_numbers = #tpu.dot_dimension_numbers<[1], [0], [0], [1], [0, 0, 1, 1], [], []>} : vector<8x128xbf16>, vector<128x512xbf16>, vector<8x512xf32> -> vector<8x512xf32>
    %c0_13 = arith.constant 0 : index
    %c0_14 = arith.constant 0 : index
    %31 = vector.load %arg6[%c0_13, %c0_14] : memref<1x512xf32, #tpu.memory_space<vmem>>, vector<1x512xf32>
    %32 = vector.broadcast %31 : vector<1x512xf32> to vector<8x512xf32>
    %33 = arith.addf %30, %32 : vector<8x512xf32>
    %cst_15 = arith.constant 5.000000e-01 : f32
    %34 = vector.broadcast %cst_15 : f32 to vector<8x512xf32>
    %35 = arith.mulf %34, %33 : vector<8x512xf32>
    %cst_16 = arith.constant 4.471500e-02 : f32
    %36 = vector.broadcast %cst_16 : f32 to vector<8x512xf32>
    %37 = arith.mulf %36, %33 : vector<8x512xf32>
    %38 = arith.mulf %37, %33 : vector<8x512xf32>
    %39 = arith.mulf %38, %33 : vector<8x512xf32>
    %40 = arith.addf %33, %39 : vector<8x512xf32>
    %cst_17 = arith.constant 0.797884583 : f32
    %41 = vector.broadcast %cst_17 : f32 to vector<8x512xf32>
    %42 = arith.mulf %41, %40 : vector<8x512xf32>
    %43 = math.tanh %42 : vector<8x512xf32>
    %cst_18 = arith.constant 1.000000e+00 : f32
    %44 = vector.broadcast %cst_18 : f32 to vector<8x512xf32>
    %45 = arith.addf %44, %43 : vector<8x512xf32>
    %46 = arith.mulf %35, %45 : vector<8x512xf32>
    %47 = arith.truncf %46 : vector<8x512xf32> to vector<8x512xbf16>
    %c0_19 = arith.constant 0 : index
    %c0_20 = arith.constant 0 : index
    %48 = vector.load %arg7[%c0_19, %c0_20] : memref<512x128xbf16, #tpu.memory_space<vmem>>, vector<512x128xbf16>
    %cst_21 = arith.constant dense<0.000000e+00> : vector<8x128xf32>
    %49 = tpu.matmul %47, %48, %cst_21 {dimension_numbers = #tpu.dot_dimension_numbers<[1], [0], [0], [1], [0, 0, 1, 1], [], []>} : vector<8x512xbf16>, vector<512x128xbf16>, vector<8x128xf32> -> vector<8x128xf32>
    %50 = vector.broadcast %10 : vector<1x128xf32> to vector<8x128xf32>
    %51 = arith.addf %49, %50 : vector<8x128xf32>
    %52 = vector.broadcast %9 : vector<1x128xf32> to vector<8x128xf32>
    %53 = arith.mulf %52, %51 : vector<8x128xf32>
    %54 = arith.addf %23, %53 : vector<8x128xf32>
    %c0_22 = arith.constant 0 : index
    %c0_23 = arith.constant 0 : index
    %c0_24 = arith.constant 0 : index
    %55 = vector.load %arg9[%c0_22, %c0_23, %c0_24] : memref<1x8x128xf32, #tpu.memory_space<vmem>>, vector<1x8x128xf32>
    %56 = vector.shape_cast %55 : vector<1x8x128xf32> to vector<8x128xf32>
    %57 = vector.shape_cast %54 : vector<8x128xf32> to vector<1x8x128xf32>
    tpu.vector_store %arg9[%c0_22, %c0_23, %c0_24], %57 {strides = array<i32>} : memref<1x8x128xf32, #tpu.memory_space<vmem>>, vector<1x8x128xf32>,
    return
  }
  func.func @transform_0(%arg0: i32) -> (i32, i32, i32) {
    %c0_i32 = arith.constant 0 : i32
    %c0_i32_0 = arith.constant 0 : i32
    %c0_i32_1 = arith.constant 0 : i32
    return %arg0, %c0_i32, %c0_i32_0 : i32, i32, i32
  }
  func.func @transform_1(%arg0: i32) -> (i32, i32) {
    %c0_i32 = arith.constant 0 : i32
    %c0_i32_0 = arith.constant 0 : i32
    %c0_i32_1 = arith.constant 0 : i32
    return %c0_i32, %c0_i32_0 : i32, i32
  }
  func.func @transform_2(%arg0: i32) -> (i32, i32) {
    %c0_i32 = arith.constant 0 : i32
    %c0_i32_0 = arith.constant 0 : i32
    %c0_i32_1 = arith.constant 0 : i32
    return %c0_i32, %c0_i32_0 : i32, i32
  }
  func.func @transform_3(%arg0: i32) -> (i32, i32) {
    %c0_i32 = arith.constant 0 : i32
    %c0_i32_0 = arith.constant 0 : i32
    %c0_i32_1 = arith.constant 0 : i32
    return %c0_i32, %c0_i32_0 : i32, i32
  }
  func.func @transform_4(%arg0: i32) -> (i32, i32) {
    %c0_i32 = arith.constant 0 : i32
    %c0_i32_0 = arith.constant 0 : i32
    %c0_i32_1 = arith.constant 0 : i32
    return %c0_i32, %c0_i32_0 : i32, i32
  }
  func.func @transform_5(%arg0: i32) -> (i32, i32) {
    %c0_i32 = arith.constant 0 : i32
    %c0_i32_0 = arith.constant 0 : i32
    %c0_i32_1 = arith.constant 0 : i32
    return %c0_i32, %c0_i32_0 : i32, i32
  }
  func.func @transform_6(%arg0: i32) -> (i32, i32) {
    %c0_i32 = arith.constant 0 : i32
    %c0_i32_0 = arith.constant 0 : i32
    %c0_i32_1 = arith.constant 0 : i32
    return %c0_i32, %c0_i32_0 : i32, i32
  }
  func.func @transform_7(%arg0: i32) -> (i32, i32) {
    %c0_i32 = arith.constant 0 : i32
    %c0_i32_0 = arith.constant 0 : i32
    %c0_i32_1 = arith.constant 0 : i32
    return %c0_i32, %c0_i32_0 : i32, i32
  }
  func.func @transform_8(%arg0: i32) -> (i32, i32, i32) {
    %c0_i32 = arith.constant 0 : i32
    %c0_i32_0 = arith.constant 0 : i32
    %c0_i32_1 = arith.constant 0 : i32
    return %arg0, %c0_i32, %c0_i32_0 : i32, i32, i32
  }
}

</mosaic_0001>

<bundles_post_ra>
// kernel: resmlp_block.1
= control target key start
LH: loop header
LB: loop body
LE: loop exit
PB: predicated region body
PF: predicated region fallthrough
CT: control target
= control target key end

     0   :  { %13 = vsyncpa [#allocation3], 0  ;;  %s2025_s0 = inlined_call_operand.hbm [shape: f32[2,8,128], index: 0, kind: input, shape index: {}]   ;;  %s2026_s1 = inlined_call_operand.vmem [shape: bf16[8,8], index: 1, kind: input, shape index: {}]   ;;  %s2027_s2 = inlined_call_operand.vmem [shape: f32[8,1], index: 2, kind: input, shape index: {}]   ;;  %s2028_s3 = inlined_call_operand.vmem [shape: f32[3,128], index: 3, kind: input, shape index: {}]   ;;  %s2029_s4 = inlined_call_operand.hbm [shape: bf16[128,512], index: 4, kind: input, shape index: {}]   ;;  %s2030_s5 = inlined_call_operand.vmem [shape: f32[1,512], index: 5, kind: input, shape index: {}]   ;;  %s2031_s6 = inlined_call_operand.hbm [shape: bf16[512,128], index: 6, kind: input, shape index: {}]   ;;  %s2032_s7 = inlined_call_operand.vmem [shape: f32[4,128], index: 7, kind: input, shape index: {}]   ;;  %s2033_s8 = inlined_call_operand.hbm [shape: f32[2,8,128], index: 8, kind: output, shape index: {}]  }
   0x1   :  { %15 = vsyncpa [#allocation3 + $0x1], 0 }
   0x2   :  { %16 = vsyncpa [#allocation6], 0 }
   0x3   :  { %17 = vsyncpa [#allocation4], 0 }
   0x4   :  { %19 = vsyncpa [#allocation4 + $0x1], 0  ;;  %s1733_s27 = smov 0   ;;  %s1735_s28 = smov 0  }
   0x5   :  { %s1737_s29 = smov 0   ;;  %s1739_s30 = smov 0  }
   0x6 LB: > { %s1754_s9 = sadd.s32 4294967295, %s1675_s30   ;;  %s1223_s10 = sadd.s32 4294967294, %s1675_s30   ;;  %s1675_s30 = sphi %s1739_s30, %s2053_s30   ;;  %s1671_s29 = sphi %s1737_s29, %s2052_s29   ;;  %s1667_s28 = sphi %s1735_s28, %s2051_s28   ;;  %s1663_s27 = sphi %s1733_s27, %s2050_s27  }
   0x7   : > { %p45_p0 = scmp.ne.s32.totalorder %s1667_s28, %s1663_s27  ;;  %p2034_p1 = scmp.eq.s32.totalorder %s1754_s9, 0 }
   0x8   : > { %p222_p3 = scmp.eq.s32.totalorder %s1223_s10, 1  ;;  %p1224_p5 = scmp.ge.s32.totalorder %s1675_s30, 1 }
   0x9   : > { %p1763_p4 = por %p2034_p1, %p45_p0  ;;  %p229_p7 = scmp.lt.s32.totalorder %s1675_s30, 3 }
   0xa   : > { %p1768_p6 = por %p222_p3, %p45_p0  ;;  %s1677_s14 = smov [#allocation5]  }
   0xb   : > { %s2037_s11 = scalar_select %p1763_p4, 1, 0 }
   0xc   : > { %s2038_s12 = scalar_select %p1768_p6, 1, 0 }
   0xd   : > { %p1773_p8 = pnand %p1224_p5, %p229_p7  ;;  %s250_s15 = sshll.u32 %s1677_s14, 4  ;;  %s1777_s15 = int_to_ptr.vmem [resolvable:$true] %s250_s15 }
   0xe   : > { %s1678_s17 = smov [#allocation7]   ;;  %s1519_s21 = scalar_lea.hbm %s2029_s4, 4096 }
   0xf   : > { %p1368_p9 = pneg %p1773_p8  ;;  %s266_s18 = sshll.u32 %s1678_s17, 4  ;;  %s1788_s18 = int_to_ptr.vmem [resolvable:$true] %s266_s18 }
  0x10   : > { %p1520_p12 = scmp.ne.s32.totalorder %s2029_s4, %s1519_s21  ;;  %p1526_p5 = scmp.lt.u32.totalorder %s1519_s21, %s2029_s4 }
  0x11   : > { %p1784_p11 = pnand %p1368_p9, %p2034_p1 }
  0x13   : > { %p1521_p13 = pneg %p1784_p11 }
  0x15   : > { %p1522_p0 = pnand %p1521_p13, %p1520_p12 }
  0x17   : > { %p1523_p3 = pneg %p1522_p0 }
  0x19   : > { %p1528_p7 = pnand %p1526_p5, %p1523_p3 }
  0x1b   : > { %1531 = shalt.err (!%p1528_p7)
}
  0x1c   : > { %s1532_s26 = scalar_lea.vmem %s1777_s15, 4096  ;;  %p1540_p2 = scmp.lt.s32.totalorder %s1777_s15, %s1777_s15 }
  0x1d   : > { %p1533_p9 = scmp.ne.s32.totalorder %s1777_s15, %s1532_s26  ;;  %p1541_p12 = scmp.lt.s32.totalorder %s1532_s26, %s1532_s26 }
  0x1f   : > { %p1535_p10 = pnand %p1533_p9, %p1521_p13  ;;  %p1542_p0 = por %p1541_p12, %p1540_p2 }
  0x21   : > { %p1536_p1 = pneg %p1535_p10 }
  0x23   : > { %p1543_p6 = pnand %p1542_p0, %p1536_p1 }
  0x25   : > { %1546 = shalt.err (!%p1543_p6)
}
  0x26   : > { %s1679_s10 = smov 256   ;;  %s1680_s14 = smov 16  }
  0x27   : > { %1371 = dma.hbm_to_vmem [thread:$0]  (!%p1784_p11), %s2029_s4, 4096, %s1777_s15, [#allocation6], %s1679_s10, %s1679_s10, %s1680_s14  }
  0x28   : > { %s1547_s22 = scalar_lea.hbm %s2031_s6, 4096 }
  0x29   : > { %p1548_p2 = scmp.ne.s32.totalorder %s2031_s6, %s1547_s22  ;;  %p1554_p10 = scmp.lt.u32.totalorder %s1547_s22, %s2031_s6 }
  0x2b   : > { %p1550_p1 = pnand %p1548_p2, %p1521_p13 }
  0x2d   : > { %p1551_p6 = pneg %p1550_p1 }
  0x2f   : > { %p1556_p3 = pnand %p1554_p10, %p1551_p6 }
  0x31   : > { %1559 = shalt.err (!%p1556_p3)
}
  0x32   : > { %s1560_s15 = scalar_lea.vmem %s1788_s18, 4096  ;;  %p1568_p12 = scmp.lt.s32.totalorder %s1788_s18, %s1788_s18 }
  0x33   : > { %p1561_p5 = scmp.ne.s32.totalorder %s1788_s18, %s1560_s15  ;;  %p1569_p0 = scmp.lt.s32.totalorder %s1560_s15, %s1560_s15 }
  0x35   : > { %p1563_p7 = pnand %p1561_p5, %p1521_p13  ;;  %p1570_p2 = por %p1569_p0, %p1568_p12 }
  0x37   : > { %p1564_p9 = pneg %p1563_p7 }
  0x39   : > { %p1571_p1 = pnand %p1570_p2, %p1564_p9 }
  0x3b   : > { %1574 = shalt.err (!%p1571_p1)
}
  0x3c   : > { %s1681_s10 = smov 64   ;;  %s1682_s14 = smov 4  }
  0x3d   : > { %1374 = dma.hbm_to_vmem [thread:$0]  (!%p1784_p11), %s2031_s6, 4096, %s1788_s18, [#allocation6], %s1681_s10, %s1681_s10, %s1682_s14  }
  0x3e   : > { %s1843_s20 = sadd.s32 1, %s1675_s30   ;;  %s32_s22 = sadd.s32 1, %s1671_s29 }
  0x3f   : > { %s29_s21 = ssub.s32 %s1675_s30, %s1843_s20  ;;  %p39_p6 = scmp.ne.s32.totalorder %s1671_s29, %s1667_s28 }
  0x40   : > { %p30_p13 = scmp.eq.s32.totalorder %s29_s21, 0  ;;  %p40_p10 = scmp.eq.s32.totalorder %s1675_s30, 0 }
  0x41   : > { %p2041_p5 = scmp.eq.s32.totalorder %s1754_s9, 1  ;;  %p1385_p9 = scmp.lt.s32.totalorder %s1675_s30, 2 }
  0x42   : > { %s1852_s23 = scalar_select %p30_p13, %s1671_s29, %s32_s22  }
  0x43   : > { %p41_p3 = por %p40_p10, %p39_p6  ;;  %p1856_p7 = por %p2041_p5, %p39_p6 }
  0x44   : > { %s283_s16 = sand.u32 1, %s1671_s29   ;;  %s1229_s18 = sshll.u32 %s1675_s30, 7 }
  0x45   : > { %s2042_s24 = scalar_select %p1856_p7, 1, 0 }
  0x46   : > { %s1228_s25 = sshll.u32 %s283_s16, 3  ;;  %s1866_s10 = scalar_lea.hbm %s2025_s0, %s1229_s18 }
  0x47   : > { %s287_s14 = scalar_lea.vmem [#allocation2], %s1228_s25  ;;  %p1870_p11 = pnand %p1385_p9, %p41_p3 }
  0x48   : > { %s294_s17 = sshll.u32 %s287_s14, 4  ;;  %s284_s21 = scalar_lea.sflag [#allocation3], %s283_s16  ;;  %s1868_s17 = int_to_ptr.vmem [resolvable:$true] %s294_s17 }
  0x49   : > { %s1575_s22 = scalar_lea.hbm %s1866_s10, 128  ;;  %p1577_p0 = pneg %p1870_p11 }
  0x4a   : > { %p1576_p12 = scmp.ne.s32.totalorder %s1866_s10, %s1575_s22  ;;  %s1580_s26 = scalar_lea.hbm %s2025_s0, 256 }
  0x4b   : > { %p1581_p13 = scmp.lt.u32.totalorder %s1866_s10, %s2025_s0  ;;  %p1582_p6 = scmp.lt.u32.totalorder %s1580_s26, %s1575_s22 }
  0x4c   : > { %p1578_p2 = pnand %p1577_p0, %p1576_p12  ;;  %p1584_p3 = scmp.lt.u32.totalorder %s1575_s22, %s1866_s10 }
  0x4d   : > { %p1583_p10 = por %p1582_p6, %p1581_p13 }
  0x4e   : > { %p1579_p1 = pneg %p1578_p2 }
  0x4f   : > { %p1585_p5 = por %p1584_p3, %p1583_p10 }
  0x51   : > { %p1586_p9 = pnand %p1585_p5, %p1579_p1 }
  0x53   : > { %1589 = shalt.err (!%p1586_p9)
}
  0x54   : > { %s1590_s16 = scalar_lea.vmem %s1868_s17, 128  ;;  %s1683_s18 = smov [#allocation2]  }
  0x55   : > { %p1591_p12 = scmp.ne.s32.totalorder %s1868_s17, %s1590_s16  ;;  %s1595_s25 = sshll.u32 %s1683_s18, 4  ;;  %s1596_s25 = int_to_ptr.vmem [resolvable:$false] %s1595_s25 }
  0x56   : > { %s1597_s15 = scalar_lea.vmem %s1596_s25, 256  ;;  %p1598_p4 = scmp.lt.s32.totalorder %s1868_s17, %s1596_s25 }
  0x57   : > { %p1593_p2 = pnand %p1591_p12, %p1577_p0  ;;  %p1599_p13 = scmp.lt.s32.totalorder %s1597_s15, %s1590_s16 }
  0x59   : > { %p1594_p7 = pneg %p1593_p2  ;;  %p1600_p6 = por %p1599_p13, %p1598_p4 }
  0x5b   : > { %p1601_p10 = pnand %p1600_p6, %p1594_p7 }
  0x5d   : > { %1604 = shalt.err (!%p1601_p10)
}
  0x5e   : > { %1378 = dma.hbm_to_vmem [thread:$0]  (!%p1870_p11), %s1866_s10, 128, %s1868_s17, %s284_s21  }
  0x5f   : > { %303 = sbr.rel (%p1773_p8) target bundleno = 828 (0x33c), region = 52  ;;  %s1902_s22 = sand.u32 (!%p1773_p8), 1, %s1667_s28  }
  0x60   : > { %s1231_s26 = sshll.u32 (!%p1773_p8), %s1902_s22, 3  ;;  %s306_s14 = scalar_lea.sflag (!%p1773_p8), [#allocation3], %s1902_s22 }
  0x61   : > { %s309_s16 = scalar_lea.vmem (!%p1773_p8), [#allocation2], %s1231_s26  ;;  %p2044_p4 = scmp.ne.s32.totalorder (!%p1773_p8), %s2037_s11, 0 }
  0x66   : > { %1650 = dma.done.wait (%p2044_p4), %s306_s14, 128  }
  0x67   : > { %1652 = vsyncadd (%p2044_p4), %s306_s14, 4294967168  ;;  %p2045_p7 = scmp.eq.s32.totalorder %s1754_s9, 0 }
  0x69   : > { %1654 = dma.done.wait (%p2045_p7), [#allocation6], 8192   ;;  %p2046_p8 = pmov %p2045_p7 }
  0x6a   : > { %v354_v0 = vlaneseq  ;;  %v1684_v1 = vmov 0.0   ;;  %vm1685_vm0 = vmmov 0   ;;  %v1686_v3 = vmov 0   ;;  %v1924_v6 = vld [vmem:[%s309_s16] sm:$0xff]  ;;  %s1301_s16 = sshll.u32 %s1754_s9, 7  ;;  %s349_s11 = scalar_lea.vmem [#allocation8], %s1231_s26 }
  0x6b   : > { %1656 = vsyncadd (%p2046_p8), [#allocation6], 4294959104  ;;  %1350 = vmatprep.subr.bf16.mxu0 %v1684_v1  ;;  %1352 = vmatprep.mubr.msk.bf16.mxu0 %vm1685_vm0, %v1684_v1  ;;  %v1929_v7 = vld [vmem:[%s2028_s3] sm:$0x7]  ;;  %v1431_v11 = vld [vmem:[#allocation5 + $0x4] ss:$16 sps:$4 sm:$0xff]   ;;  %s1981_s19 = scalar_lea.hbm %s2033_s8, %s1301_s16 }
  0x6c   : > { %v1916_v2 = vshrl.u32 %v354_v0, 7  ;;  %1430 = vset.pattern.permute.xlu0 %v1686_v3  ;;  %683 = vmatprep.mubr.bf16.mxu1 %v1686_v3  ;;  %v366_v10 = vld [vmem:[%s2027_s2] sm:$0xff]  ;;  %vm376_vm1 = vcmask 1043456   ;;  %v1435_v16 = vld [vmem:[#allocation5 + $0xc] ss:$16 sps:$4 sm:$0xff]   ;;  %vm372_vm2 = vcmask 64512  }
  0x6d   : > { %369 = vperm.xlu0 %1430, %v366_v10   ;;  %v1436_v13 = vld [vmem:[#allocation5] ss:$16 sps:$4 sm:$0xff]   ;;  %651 = vmatprep.subr.bf16.mxu1 %v1431_v11  ;;  %v1437_v14 = vld [vmem:[#allocation5 + $0x24] ss:$16 sps:$4 sm:$0xff]   ;;  %v1433_v21 = vld [vmem:[#allocation5 + $0x8] ss:$16 sps:$4 sm:$0xff]  }
  0x6e   : > { %v1919_v4 = vsub.s32 0, %v1916_v2  ;;  %v1922_v5 = vsub.s32 1, %v1916_v2  ;;  %652 = vmatpush1.bf16.msra.mxu1 %v1436_v13  ;;  %v1442_v17 = vld [vmem:[#allocation5 + $0x20] ss:$16 sps:$4 sm:$0xff]   ;;  %v1443_v19 = vld [vmem:[#allocation5 + $0x44] ss:$16 sps:$4 sm:$0xff]  }
  0x6f   : > { %653 = vmatprep.subr.bf16.mxu1 %v1437_v14  ;;  %v365_v20 = vld [vmem:[%s2026_s1] sm:$0xf]  ;;  %v1449_v24 = vld [vmem:[#allocation5 + $0x64] ss:$16 sps:$4 sm:$0xff]   ;;  %v1441_v25 = vld [vmem:[#allocation5 + $0x2c] ss:$16 sps:$4 sm:$0xff]  }
  0x70   : > { %v357_v8 = vrot.slane %v1929_v7, %v1919_v4  ;;  %v362_v9 = vrot.slane %v1929_v7, %v1922_v5  ;;  %v1448_v23 = vld [vmem:[#allocation5 + $0x40] ss:$16 sps:$4 sm:$0xff]   ;;  %v1439_v26 = vld [vmem:[#allocation5 + $0x28] ss:$16 sps:$4 sm:$0xff]   ;;  %v1447_v28 = vld [vmem:[#allocation5 + $0x4c] ss:$16 sps:$4 sm:$0xff]  }
  0x71   : > { %v1454_v27 = vld [vmem:[#allocation5 + $0x60] ss:$16 sps:$4 sm:$0xff]   ;;  %v1455_v29 = vld [vmem:[#allocation5 + $0x84] ss:$16 sps:$4 sm:$0xff]   ;;  %v1445_v31 = vld [vmem:[#allocation5 + $0x48] ss:$16 sps:$4 sm:$0xff]  }
  0x72   : > { %v358_v12 = vmul.f32 %v357_v8, %v1924_v6  ;;  %654 = vmatpush1.bf16.msra.mxu1 %v1442_v17  ;;  %v1460_v30 = vld [vmem:[#allocation5 + $0x80] ss:$16 sps:$4 sm:$0xff]   ;;  %v1453_v32 = vld [vmem:[#allocation5 + $0x6c] ss:$16 sps:$4 sm:$0xff]   ;;  %v1451_v33 = vld [vmem:[#allocation5 + $0x68] ss:$16 sps:$4 sm:$0xff]  }
  0x73   : > { %655 = vmatprep.subr.bf16.mxu1 %v1443_v19  ;;  %v1459_v34 = vld [vmem:[#allocation5 + $0x8c] ss:$16 sps:$4 sm:$0xff]   ;;  %v1457_v35 = vld [vmem:[#allocation5 + $0x88] ss:$16 sps:$4 sm:$0xff]   ;;  %v1461_v36 = vld [vmem:[#allocation5 + $0xa4] ss:$16 sps:$4 sm:$0xff]  }
  0x74   : > { %v363_v15 = vadd.f32 %v362_v9, %v358_v12  ;;  %v1465_v37 = vld [vmem:[#allocation5 + $0xac] ss:$16 sps:$4 sm:$0xff]   ;;  %v1463_v38 = vld [vmem:[#allocation5 + $0xa8] ss:$16 sps:$4 sm:$0xff]   ;;  %v1466_v39 = vld [vmem:[#allocation5 + $0xa0] ss:$16 sps:$4 sm:$0xff]  }
  0x75   : > { %v1467_v40 = vld [vmem:[#allocation5 + $0xc4] ss:$16 sps:$4 sm:$0xff]   ;;  %v1471_v41 = vld [vmem:[#allocation5 + $0xcc] ss:$16 sps:$4 sm:$0xff]   ;;  %v1469_v42 = vld [vmem:[#allocation5 + $0xc8] ss:$16 sps:$4 sm:$0xff]  }
  0x76   : > { %v364_v18 = vpack.c.bf16 %v363_v15, %v363_v15  ;;  %656 = vmatpush1.bf16.msra.mxu1 %v1448_v23  ;;  %v1472_v43 = vld [vmem:[#allocation5 + $0xc0] ss:$16 sps:$4 sm:$0xff]   ;;  %v1473_v44 = vld [vmem:[#allocation5 + $0xe4] ss:$16 sps:$4 sm:$0xff]   ;;  %v1477_v45 = vld [vmem:[#allocation5 + $0xec] ss:$16 sps:$4 sm:$0xff]  }
  0x77   : > { %657 = vmatprep.subr.bf16.mxu1 %v1449_v24  ;;  %v1475_v46 = vld [vmem:[#allocation5 + $0xe8] ss:$16 sps:$4 sm:$0xff]   ;;  %v1478_v47 = vld [vmem:[#allocation5 + $0xe0] ss:$16 sps:$4 sm:$0xff]   ;;  %v1943_v48 = vsub.s32 2, %v1916_v2  ;;  %s1134_s13 = sshll.u32 %s349_s11, 4  ;;  %s1983_s13 = int_to_ptr.vmem [resolvable:$true] %s1134_s13 }
  0x78   : > { %v378_v22 = vsel %vm376_vm1, %v364_v18, 0  ;;  %v1950_v52 = vld [vmem:[%s2032_s7] sm:$0xf]  ;;  %v1479_v0 = vld [vmem:[#allocation7 + $0x40] sm:$0xff]   ;;  %v1483_v8 = vld [vmem:[#allocation7 + $0x48] sm:$0xff]   ;;  %s1121_s21 = scalar_lea.sflag [#allocation4], %s1902_s22 }
  0x79   : > { %1351 = vmatpush3.bf16.msra.mxu0 %v378_v22  ;;  %v423_v50 = vrot.slane %v1929_v7, %v1943_v48  ;;  %v429_v58 = vrot.slane %v1950_v52, %v1919_v4  ;;  %v434_v60 = vrot.slane %v1950_v52, %v1922_v5  ;;  %v1480_v1 = vld [vmem:[#allocation7 + $0xc0] sm:$0xff]   ;;  %v1485_v9 = vld [vmem:[#allocation7 + $0x8] sm:$0xff]   ;;  %v1487_v11 = vld [vmem:[#allocation7 + $0x50] sm:$0xff]   ;;  %s1605_s18 = scalar_lea.vmem %s1983_s13, 128  ;;  %p2047_p0 = scmp.ne.s32.totalorder %s2042_s24, 0 }
  0x7a   : > { %692 = vmatprep.subr.bf16.mxu0 %v1435_v16  ;;  %658 = vmatpush1.bf16.msra.mxu1 %v1454_v27  ;;  %v1482_v7 = vld [vmem:[#allocation7 + $0x80] sm:$0xff]   ;;  %v1486_v10 = vld [vmem:[#allocation7 + $0x88] sm:$0xff]   ;;  %v1488_v12 = vld [vmem:[#allocation7 + $0xd0] sm:$0xff]   ;;  %p1606_p11 = scmp.ne.s32.totalorder %s1983_s13, %s1605_s18  ;;  %s1687_s9 = smov [#allocation8]  }
  0x7b   : > { %659 = vmatprep.subr.bf16.mxu1 %v1455_v29  ;;  %v1489_v13 = vld [vmem:[#allocation7 + $0x10] sm:$0xff]   ;;  %v1491_v15 = vld [vmem:[#allocation7 + $0x58] sm:$0xff]   ;;  %v1495_v19 = vld [vmem:[#allocation7 + $0x60] sm:$0xff]   ;;  %s1609_s26 = sshll.u32 %s1687_s9, 4  ;;  %s1610_s26 = int_to_ptr.vmem [resolvable:$false] %s1609_s26 }
  0x7c   : > { %1353 = vmatmul.mubr.msk.bf16.vlgmr.msra.gmra.mrb[0].mxu0 %vm372_vm2, %v365_v20  ;;  %v1490_v14 = vld [vmem:[#allocation7 + $0x90] sm:$0xff]   ;;  %v1492_v16 = vld [vmem:[#allocation7 + $0xd8] sm:$0xff]   ;;  %v1496_v20 = vld [vmem:[#allocation7 + $0xe0] sm:$0xff]   ;;  %p1607_p1 = pnand %p1606_p11, %p2047_p0  ;;  %s1611_s25 = scalar_lea.vmem %s1610_s26, 256 }
  0x7d   : > { %693 = vmatpush1.bf16.msra.mxu0 %v1433_v21  ;;  %724 = vmatprep.mubr.bf16.mxu0 %v1686_v3  ;;  %v1481_v3 = vld [vmem:[#allocation7] sm:$0xff]   ;;  %v1493_v17 = vld [vmem:[#allocation7 + $0x18] sm:$0xff]   ;;  %v1499_v23 = vld [vmem:[#allocation7 + $0x68] sm:$0xff]   ;;  %p1612_p5 = scmp.lt.s32.totalorder %s1983_s13, %s1610_s26  ;;  %p1613_p9 = scmp.lt.s32.totalorder %s1611_s25, %s1605_s18 }
  0x7e   : > { %694 = vmatprep.subr.bf16.mxu0 %v1441_v25  ;;  %660 = vmatpush1.bf16.msra.mxu1 %v1460_v30  ;;  %v1494_v18 = vld [vmem:[#allocation7 + $0x98] sm:$0xff]   ;;  %v1497_v21 = vld [vmem:[#allocation7 + $0x20] sm:$0xff]   ;;  %v1500_v24 = vld [vmem:[#allocation7 + $0xe8] sm:$0xff]   ;;  %p1608_p3 = pneg %p1607_p1 }
  0x7f   : > { %661 = vmatprep.subr.bf16.mxu1 %v1461_v36  ;;  %v1498_v22 = vld [vmem:[#allocation7 + $0xa0] sm:$0xff]   ;;  %v1501_v25 = vld [vmem:[#allocation7 + $0x28] sm:$0xff]   ;;  %v1503_v27 = vld [vmem:[#allocation7 + $0x70] sm:$0xff]   ;;  %v485_v36 = vsub.s32 3, %v1916_v2  ;;  %p1614_p12 = por %p1613_p9, %p1612_p5 }
  0x80   : > { %v1505_v29 = vld [vmem:[#allocation7 + $0x30] sm:$0xff]  }
  0x81   : > { %695 = vmatpush1.bf16.msra.mxu0 %v1439_v26  ;;  %v1502_v26 = vld [vmem:[#allocation7 + $0xa8] sm:$0xff]   ;;  %v1506_v30 = vld [vmem:[#allocation7 + $0xb0] sm:$0xff]   ;;  %p1615_p2 = pnand %p1614_p12, %p1608_p3 }
  0x82   : > { %696 = vmatprep.subr.bf16.mxu0 %v1447_v28  ;;  %662 = vmatpush1.bf16.msra.mxu1 %v1466_v39  ;;  %v1504_v28 = vld [vmem:[#allocation7 + $0xf0] sm:$0xff]  }
  0x83   : > { %663 = vmatprep.subr.bf16.mxu1 %v1467_v40 }
  0x85   : > { %697 = vmatpush1.bf16.msra.mxu0 %v1445_v31  ;;  %v1507_v31 = vld [vmem:[#allocation7 + $0x78] sm:$0xff]  }
  0x86   : > { %698 = vmatprep.subr.bf16.mxu0 %v1453_v32  ;;  %664 = vmatpush1.bf16.msra.mxu1 %v1472_v43  ;;  %v1508_v32 = vld [vmem:[#allocation7 + $0xf8] sm:$0xff]  }
  0x87   : > { %665 = vmatprep.subr.bf16.mxu1 %v1473_v44 }
  0x89   : > { %699 = vmatpush1.bf16.msra.mxu0 %v1451_v33  ;;  %v1509_v33 = vld [vmem:[#allocation7 + $0x38] sm:$0xff]  }
  0x8a   : > { %700 = vmatprep.subr.bf16.mxu0 %v1459_v34  ;;  %666 = vmatpush1.bf16.msra.mxu1 %v1478_v47  ;;  %v1510_v34 = vld [vmem:[#allocation7 + $0xb8] sm:$0xff]  }
  0x8b   : > { %1306 = vmatprep.subr.bf16.mxu1 %v1479_v0 }
  0x8d   : > { %701 = vmatpush1.bf16.msra.mxu0 %v1457_v35  ;;  %v469_v35 = vld [vmem:[%s2030_s5] sm:$0xf] }
  0x8e   : > { %702 = vmatprep.subr.bf16.mxu0 %v1465_v37  ;;  %v474_v37 = vrot.slane %v469_v35, %v1919_v4  ;;  %v478_v39 = vrot.slane %v469_v35, %v1922_v5  ;;  %v486_v40 = vrot.slane %v469_v35, %v485_v36 }
  0x91   : > { %703 = vmatpush1.bf16.msra.mxu0 %v1463_v38  ;;  %v482_v38 = vrot.slane %v469_v35, %v1943_v48 }
  0x92   : > { %704 = vmatprep.subr.bf16.mxu0 %v1471_v41 }
  0x95   : > { %705 = vmatpush1.bf16.msra.mxu0 %v1469_v42 }
  0x96   : > { %706 = vmatprep.subr.bf16.mxu0 %v1477_v45 }
  0x99   : > { %707 = vmatpush1.bf16.msra.mxu0 %v1475_v46 }
  0x9a   : > { %1328 = vmatprep.subr.bf16.mxu0 %v1480_v1 }
  0xec   : > { %v370_v49 = vpop.permute.xlu0 %369 }
 0x14f   : > { %v414_v51 = vpop.f32.mrb[0].mxu0 }
 0x150   : > { %v415_v53 = vadd.f32 %v414_v51, %v370_v49  ;;  %v1354_v54 = vpop.f32.mrb[1].mxu0 }
 0x151   : > { %v417_v55 = vpop.f32.mrb[2].mxu0 }
 0x152   : > { %v424_v56 = vmul.f32 %v423_v50, %v415_v53  ;;  %v1355_v57 = vpop.f32.mrb[3].mxu0 }
 0x154   : > { %v1955_v59 = vadd.f32 %v424_v56, %v1924_v6  ;;  %v1484_v6 = vld [vmem:[#allocation7 + $0xc8] sm:$0xff]  }
 0x156   : > { %v430_v61 = vmul.f32 %v429_v58, %v1955_v59 }
 0x158   : > { %v435_v62 = vadd.f32 %v434_v60, %v430_v61 }
 0x15a   : > { %v436_v63 = vpack.c.bf16 %v435_v62, %v435_v62 }
 0x15c   : > { %684 = vmatmul.mubr.bf16.vlgmr.msra.gmra.mrb[0].mxu1 %v436_v63  ;;  %725 = vmatmul.mubr.bf16.vlgmr.msra.gmra.mrb[4].mxu0 %v436_v63 }
 0x15d   : > { %1307 = vmatpush3.bf16.msra.mxu1 %v1481_v3  ;;  %1329 = vmatpush3.bf16.msra.mxu0 %v1482_v7 }
 0x15e   : > { %1308 = vmatprep.subr.bf16.mxu1 %v1483_v8  ;;  %1330 = vmatprep.subr.bf16.mxu0 %v1484_v6 }
 0x161   : > { %1309 = vmatpush3.bf16.msra.mxu1 %v1485_v9  ;;  %1331 = vmatpush3.bf16.msra.mxu0 %v1486_v10 }
 0x162   : > { %1310 = vmatprep.subr.bf16.mxu1 %v1487_v11  ;;  %1332 = vmatprep.subr.bf16.mxu0 %v1488_v12 }
 0x165   : > { %1311 = vmatpush3.bf16.msra.mxu1 %v1489_v13  ;;  %1333 = vmatpush3.bf16.msra.mxu0 %v1490_v14 }
 0x166   : > { %1312 = vmatprep.subr.bf16.mxu1 %v1491_v15  ;;  %1334 = vmatprep.subr.bf16.mxu0 %v1492_v16 }
 0x169   : > { %1313 = vmatpush3.bf16.msra.mxu1 %v1493_v17  ;;  %1335 = vmatpush3.bf16.msra.mxu0 %v1494_v18 }
 0x16a   : > { %1314 = vmatprep.subr.bf16.mxu1 %v1495_v19  ;;  %1336 = vmatprep.subr.bf16.mxu0 %v1496_v20 }
 0x16d   : > { %1315 = vmatpush3.bf16.msra.mxu1 %v1497_v21  ;;  %1337 = vmatpush3.bf16.msra.mxu0 %v1498_v22 }
 0x16e   : > { %1316 = vmatprep.subr.bf16.mxu1 %v1499_v23  ;;  %1338 = vmatprep.subr.bf16.mxu0 %v1500_v24 }
 0x171   : > { %1317 = vmatpush3.bf16.msra.mxu1 %v1501_v25  ;;  %1339 = vmatpush3.bf16.msra.mxu0 %v1502_v26 }
 0x172   : > { %1318 = vmatprep.subr.bf16.mxu1 %v1503_v27  ;;  %1340 = vmatprep.subr.bf16.mxu0 %v1504_v28 }
 0x175   : > { %1319 = vmatpush3.bf16.msra.mxu1 %v1505_v29  ;;  %1341 = vmatpush3.bf16.msra.mxu0 %v1506_v30 }
 0x176   : > { %1320 = vmatprep.subr.bf16.mxu1 %v1507_v31  ;;  %1342 = vmatprep.subr.bf16.mxu0 %v1508_v32 }
 0x179   : > { %1321 = vmatpush3.bf16.msra.mxu1 %v1509_v33  ;;  %1343 = vmatpush3.bf16.msra.mxu0 %v1510_v34  ;;  %v840_v34 = vrot.slane %v1950_v52, %v485_v36 }
 0x22f   : > { %v685_v41 = vpop.f32.mrb[0].mxu1  ;;  %v726_v42 = vpop.f32.mrb[4].mxu0 }
 0x230   : > { %v686_v43 = vadd.f32 %v685_v41, %v474_v37  ;;  %v727_v44 = vadd.f32 %v726_v42, %v482_v38  ;;  %v687_v45 = vpop.f32.mrb[1].mxu1  ;;  %v728_v46 = vpop.f32.mrb[5].mxu0 }
 0x231   : > { %v688_v47 = vadd.f32 %v687_v45, %v478_v39  ;;  %v729_v49 = vadd.f32 %v728_v46, %v486_v40  ;;  %v689_v50 = vpop.f32.mrb[2].mxu1  ;;  %v730_v51 = vpop.f32.mrb[6].mxu0  ;;  %v1116_v45 = vrot.slane %v1950_v52, %v1943_v48 }
 0x232   : > { %v737_v53 = vmul.f32 0.044715, %v686_v43  ;;  %v739_v54 = vmul.f32 0.044715, %v727_v44  ;;  %v690_v4 = vpop.f32.mrb[3].mxu1  ;;  %v731_v55 = vpop.f32.mrb[7].mxu0 }
 0x233   : > { %v738_v56 = vmul.f32 0.044715, %v688_v47  ;;  %v740_v57 = vmul.f32 0.044715, %v729_v49  ;;  %v733_v15 = vmul.f32 0.5, %v686_v43  ;;  %v734_v18 = vmul.f32 0.5, %v688_v47 }
 0x234   : > { %v741_v5 = vmul.f32 %v737_v53, %v686_v43  ;;  %v743_v58 = vmul.f32 %v739_v54, %v727_v44  ;;  %v736_v21 = vmul.f32 0.5, %v729_v49  ;;  %v735_v25 = vmul.f32 0.5, %v727_v44 }
 0x235   : > { %v742_v60 = vmul.f32 %v738_v56, %v688_v47  ;;  %v744_v61 = vmul.f32 %v740_v57, %v729_v49 }
 0x236   : > { %v745_v62 = vmul.f32 %v741_v5, %v686_v43  ;;  %v747_v63 = vmul.f32 %v743_v58, %v727_v44 }
 0x237   : > { %v746_v0 = vmul.f32 %v742_v60, %v688_v47  ;;  %v748_v1 = vmul.f32 %v744_v61, %v729_v49 }
 0x238   : > { %v749_v3 = vadd.f32 %v745_v62, %v686_v43  ;;  %v751_v7 = vadd.f32 %v747_v63, %v727_v44 }
 0x239   : > { %v750_v8 = vadd.f32 %v746_v0, %v688_v47  ;;  %v752_v6 = vadd.f32 %v748_v1, %v729_v49 }
 0x23a   : > { %v753_v9 = vmul.f32 0.7978846, %v749_v3  ;;  %v755_v12 = vmul.f32 0.7978846, %v751_v7 }
 0x23b   : > { %v754_v10 = vmul.f32 0.7978846, %v750_v8  ;;  %v756_v11 = vmul.f32 0.7978846, %v752_v6 }
 0x23c   : > { %1511 = vtanh.f32 %v753_v9 }
 0x23d   : > { %1513 = vtanh.f32 %v754_v10 }
 0x23e   : > { %1515 = vtanh.f32 %v756_v11 }
 0x23f   : > { %1517 = vtanh.f32 %v755_v12 }
 0x246   : > { %v1512_v13 = vpop.eup %1511 }
 0x247   : > { %v1514_v14 = vpop.eup %1513  ;;  %v761_v16 = vadd.f32 1.0, %v1512_v13 }
 0x248   : > { %v1516_v17 = vpop.eup %1515  ;;  %v762_v19 = vadd.f32 1.0, %v1514_v14 }
 0x249   : > { %v1518_v20 = vpop.eup %1517  ;;  %v764_v22 = vadd.f32 1.0, %v1516_v17  ;;  %v765_v23 = vmul.f32 %v761_v16, %v733_v15 }
 0x24a   : > { %v766_v24 = vmul.f32 %v762_v19, %v734_v18  ;;  %v763_v26 = vadd.f32 1.0, %v1518_v20 }
 0x24b   : > { %v768_v27 = vmul.f32 %v764_v22, %v736_v21  ;;  %v769_v31 = vpack.c.bf16 %v765_v23, %v765_v23 }
 0x24c   : > { %v770_v28 = vpack.c.bf16 %v766_v24, %v766_v24  ;;  %v767_v29 = vmul.f32 %v763_v26, %v735_v25 }
 0x24d   : > { %v772_v30 = vpack.c.bf16 %v768_v27, %v768_v27 }
 0x24e   : > { %1065 = vmatprep.mubr.bf16.mxu1 %v770_v28  ;;  %v771_v32 = vpack.c.bf16 %v767_v29, %v767_v29 }
 0x24f   : > { %1105 = vmatprep.mubr.bf16.mxu0 %v772_v30  ;;  %1066 = vmatmul.mubr.bf16.vlgmr.msra.gmra.mrb[4].mxu1 %v769_v31 }
 0x250   : > { %1106 = vmatmul.mubr.bf16.vlgmr.msra.gmra.mrb[8].mxu0 %v771_v32 }
 0x322   : > { %v1322_v33 = vpop.f32.mrb[4].mxu1 }
 0x323   : > { %v1344_v35 = vpop.f32.mrb[8].mxu0  ;;  %v1323_v37 = vpop.f32.mrb[5].mxu1 }
 0x324   : > { %v1324_v38 = vadd.f32 %v1323_v37, %v1322_v33  ;;  %v1345_v39 = vpop.f32.mrb[9].mxu0  ;;  %v1325_v40 = vpop.f32.mrb[6].mxu1 }
 0x325   : > { %v1346_v41 = vadd.f32 %v1345_v39, %v1344_v35  ;;  %v1347_v42 = vpop.f32.mrb[10].mxu0  ;;  %v1326_v43 = vpop.f32.mrb[7].mxu1 }
 0x326   : > { %v1068_v44 = vadd.f32 %v1324_v38, %v840_v34  ;;  %v1348_v46 = vpop.f32.mrb[11].mxu0 }
 0x328   : > { %v1108_v47 = vadd.f32 %v1346_v41, %v1068_v44 }
 0x32a   : > { %v1117_v2 = vmul.f32 %v1116_v45, %v1108_v47 }
 0x32c   : > { %v1118_v36 = vadd.f32 %v1117_v2, %v1955_v59 }
 0x32e   : > { %1119 = vst [vmem:[%s349_s11] sm:$0xff] %v1118_v36 }
 0x32f   : > { %1618 = shalt.err (!%p1615_p2)
}
 0x330   : > { %s1619_s22 = scalar_lea.hbm %s1981_s19, 128  ;;  %s1623_s16 = scalar_lea.hbm %s2033_s8, 256 }
 0x331   : > { %p1620_p13 = scmp.ne.s32.totalorder %s1981_s19, %s1619_s22  ;;  %p1624_p4 = scmp.lt.u32.totalorder %s1981_s19, %s2033_s8 }
 0x332   : > { %p1625_p7 = scmp.lt.u32.totalorder %s1623_s16, %s1619_s22  ;;  %p1627_p11 = scmp.lt.u32.totalorder %s1619_s22, %s1981_s19 }
 0x333   : > { %p1621_p6 = pnand %p1620_p13, %p2047_p0 }
 0x334   : > { %p1626_p8 = por %p1625_p7, %p1624_p4 }
 0x335   : > { %p1622_p10 = pneg %p1621_p6 }
 0x336   : > { %p1628_p1 = por %p1627_p11, %p1626_p8 }
 0x338   : > { %p1629_p3 = pnand %p1628_p1, %p1622_p10 }
 0x33a   : > { %1632 = shalt.err (!%p1629_p3)
}
 0x33b   : > { %1366 = dma.vmem_to_hbm [thread:$0]  (%p2047_p0), %s1983_s13, 128, %s1981_s19, %s1121_s21  }
 0x33c PF: > { %s1146_s17 = sand.u32 1, %s1663_s27   ;;  %p2048_p5 = scmp.ne.s32.totalorder %s2038_s12, 0 }
 0x33d   : > { %p2049_p9 = scmp.ge.s32.totalorder %s1675_s30, 2  ;;  %s1147_s18 = scalar_lea.sflag [#allocation4], %s1146_s17 }
 0x33f   : > { %p1380_p12 = pnand %p2049_p9, %p2048_p5 }
 0x341   : > { %1658 = dma.done.wait (!%p1380_p12), %s1147_s18, 128  }
 0x342   : > { %1660 = vsyncadd (!%p1380_p12), %s1147_s18, 4294967168  ;;  %p22_p2 = scmp.ge.s32.totalorder %s1843_s20, 4   ;;  %s2050_s27 = smov %s1667_s28 }
 0x343   : > { %s2051_s28 = smov %s1671_s29  ;;  %s2052_s29 = smov %s1852_s23 }
 0x344   : > { %s2053_s30 = smov %s1843_s20  ;;  %24 = sbr.rel (!%p22_p2) target bundleno = 6 (0x6), region = 105 }
 0x34b   :  { %1152 = vsyncpa [#allocation3], 1 }
 0x34c   :  { %1154 = vsyncpa [#allocation3 + $0x1], 1 }
 0x34d   :  { %1155 = vsyncpa [#allocation6], 1 }
 0x34e   :  { %1156 = vsyncpa [#allocation4], 1 }
 0x34f   :  { %1158 = vsyncpa [#allocation4 + $0x1], 1 }

</bundles_post_ra>
